<compile_context>
chip_gen: v7x
topology: tpu7x:2x2x1
jax: 0.10.0
libtpu: 0.0.40
codegen_flags: <defaults>
</compile_context>

<pallas_src>
import functools

import jax
import jax.numpy as jnp
from jax import lax
from jax.experimental import pallas as pl
from jax.experimental.pallas import tpu as pltpu


def _round_up(x, m):
    return (x + m - 1) // m * m


def ngram_rnn_kernel(x_ref, w_hh_ref, w_out_ref, b_out_ref, out_ref,
                     h_ref, h_all_ref):
    """One time-chunk of the fused ReLU-RNN recurrence + batched output Linear.

    x_ref      : (T_CHUNK, B_pad, H_pad)  pre-folded input contributions
                 (embedding @ w_ih + b_ih + b_hh), time-major.
    w_hh_ref   : (H_pad, H_pad)           hidden->hidden weights.
    w_out_ref  : (H_pad, V_pad)           output linear weights.
    b_out_ref  : (1, V_pad)               output linear bias.
    out_ref    : (T_CHUNK, B_pad, V_pad)  logits for this chunk.
    h_ref      : (B_pad, H_pad)           hidden state carried across grid steps.
    h_all_ref  : (T_CHUNK, B_pad, H_pad)  per-step hidden states for this chunk.
    """
    t_chunk, b_pad, h_pad = x_ref.shape
    v_pad = out_ref.shape[-1]

    # h_0 = 0 (PyTorch default when no initial hidden state is supplied).
    @pl.when(pl.program_id(0) == 0)
    def _():
        h_ref[...] = jnp.zeros_like(h_ref)

    # Hoist loop invariants: w_hh is read once and stays resident in vregs.
    w_hh = w_hh_ref[...]
    h = h_ref[...]

    # Fully unrolled short recurrence; only (B,H)@(H,H) is on the serial path.
    for t in range(t_chunk):
        h = jnp.maximum(
            jnp.dot(h, w_hh, preferred_element_type=jnp.float32) + x_ref[t],
            0.0)
        h_all_ref[t] = h          # dense (B_pad, H_pad) store, off the carry chain

    h_ref[...] = h                # carry hidden state to the next grid step

    # Batched output projection for the whole chunk: one (T_CHUNK*B, H)@(H, V).
    # Merging leading dims is layout-free (no cross-tile reshape).
    h_flat = h_all_ref[...].reshape(t_chunk * b_pad, h_pad)
    logits = (jnp.dot(h_flat, w_out_ref[...],
                      preferred_element_type=jnp.float32)
              + b_out_ref[...])
    out_ref[...] = logits.reshape(t_chunk, b_pad, v_pad)


def ngram_rnn_forward(tokens, params, *, t_chunk=8):
    """Full forward pass matching NGramRNN.forward.

    tokens: (B, T) int32 token ids.
    returns: (B, T, V) float32 logits.
    """
    emb_w = params["emb_w"]        # (V, V)  embedding table (frozen)
    w_ih = params["w_ih"]          # (V, H)
    w_hh = params["w_hh"]          # (H, H)
    b_ih = params["b_ih"]          # (1, H)
    b_hh = params["b_hh"]          # (1, H)
    w_out = params["w_out"]        # (H, V)
    b_out = params["b_out"]        # (1, V)

    B, T = tokens.shape
    V, H = w_ih.shape

    # Lane/sublane-dense padded sizes.
    H_pad = _round_up(max(H, 128), 128)
    V_pad = _round_up(max(V, 128), 128)
    B_pad = _round_up(max(B, 8), 8)
    T_pad = _round_up(T, t_chunk)

    # --- Fold embedding + input projection + both biases into ONE table; the
    # per-token work in the wrapper is then a single gather (no extra adds).
    # TODO(synk): for static params this fold could be precomputed once
    # outside the jit'd forward; it is tiny (V x H).
    w_fused = jnp.dot(emb_w, w_ih) + (b_ih + b_hh)       # (V, H)
    x_proj = jnp.take(w_fused, tokens, axis=0)           # (B, T, H)

    # Time-major, zero-padded (exact: padded lanes stay 0 through the ReLU RNN).
    x_proj = jnp.transpose(x_proj, (1, 0, 2))            # (T, B, H)
    x_proj = jnp.pad(
        x_proj, ((0, T_pad - T), (0, B_pad - B), (0, H_pad - H)))

    w_hh_p = jnp.pad(w_hh, ((0, H_pad - H), (0, H_pad - H)))
    w_out_p = jnp.pad(w_out, ((0, H_pad - H), (0, V_pad - V)))
    b_out_p = jnp.pad(b_out, ((0, 0), (0, V_pad - V)))

    # TODO(synk): for large vocab/hidden, store w_hh/w_out/x_proj in bf16
    # (f32 accumulation) on v6e/v7x to halve VMEM traffic and double MXU rate.

    grid = (T_pad // t_chunk,)
    out_pad = pl.pallas_call(
        ngram_rnn_kernel,
        out_shape=jax.ShapeDtypeStruct((T_pad, B_pad, V_pad), jnp.float32),
        grid=grid,
        in_specs=[
            pl.BlockSpec((t_chunk, B_pad, H_pad), lambda i: (i, 0, 0)),
            pl.BlockSpec((H_pad, H_pad), lambda i: (0, 0)),
            pl.BlockSpec((H_pad, V_pad), lambda i: (0, 0)),
            pl.BlockSpec((1, V_pad), lambda i: (0, 0)),
        ],
        out_specs=pl.BlockSpec((t_chunk, B_pad, V_pad), lambda i: (i, 0, 0)),
        scratch_shapes=[
            pltpu.VMEM((B_pad, H_pad), jnp.float32),            # hidden carry
            pltpu.VMEM((t_chunk, B_pad, H_pad), jnp.float32),   # chunk hiddens
        ],
        compiler_params=pltpu.CompilerParams(
            dimension_semantics=("arbitrary",)),   # sequential recurrence
    )(x_proj, w_hh_p, w_out_p, b_out_p)

    # Slice off padding and return PyTorch batch_first layout (tiny copy).
    return jnp.transpose(out_pad[:T, :B, :V], (1, 0, 2))


def ngram_rnn_reference(tokens, params):
    """Pure-JAX reference of the same forward pass (for validation)."""
    emb_w = params["emb_w"]
    w_ih, w_hh = params["w_ih"], params["w_hh"]
    b_ih, b_hh = params["b_ih"], params["b_hh"]
    w_out, b_out = params["w_out"], params["b_out"]

    embed = jnp.take(emb_w, tokens, axis=0)          # (B, T, V)
    x = jnp.transpose(embed, (1, 0, 2))              # (T, B, V)
    B = x.shape[1]
    H = w_ih.shape[1]

    def scan_step(h, x_t):
        h_new = jnp.maximum(x_t @ w_ih + h @ w_hh + b_ih + b_hh, 0.0)
        return h_new, h_new @ w_out + b_out

    _, outs = lax.scan(scan_step, jnp.zeros((B, H), jnp.float32), x)
    return jnp.transpose(outs, (1, 0, 2))


def init_params(key, vocab_size, output_dim):
    """Deterministic parameter init matching the module's shapes.

    PyTorch shapes: embedding.weight (V, V); rnn weight_ih_l0 (H, V),
    weight_hh_l0 (H, H), biases (H,); linear.weight (V, H), bias (V,).
    We store the matmul operands pre-transposed to (in, out).
    """
    ks = jax.random.split(key, 7)
    V, H = vocab_size, output_dim
    bound_rnn = 1.0 / jnp.sqrt(H)
    bound_lin = 1.0 / jnp.sqrt(H)
    return {
        "emb_w": jax.random.normal(ks[0], (V, V), jnp.float32),
        "w_ih": jax.random.uniform(ks[1], (V, H), jnp.float32,
                                   -bound_rnn, bound_rnn),
        "w_hh": jax.random.uniform(ks[2], (H, H), jnp.float32,
                                   -bound_rnn, bound_rnn),
        "b_ih": jax.random.uniform(ks[3], (1, H), jnp.float32,
                                   -bound_rnn, bound_rnn),
        "b_hh": jax.random.uniform(ks[4], (1, H), jnp.float32,
                                   -bound_rnn, bound_rnn),
        "w_out": jax.random.uniform(ks[5], (H, V), jnp.float32,
                                    -bound_lin, bound_lin),
        "b_out": jax.random.uniform(ks[6], (1, V), jnp.float32,
                                    -bound_lin, bound_lin),
    }


if __name__ == "__main__":
    VOCAB = 32      # vocab_size (also the embedding dim, per the module)
    HIDDEN = 32     # output_dim (RNN hidden size)
    BATCH = 2
    SEQ = 16        # 2 time-chunks -> exercises the grid-carried hidden state

    root = jax.random.PRNGKey(0)
    k_params, k_tok = jax.random.split(root)
    params = init_params(k_params, VOCAB, HIDDEN)
    tokens = jax.random.randint(k_tok, (BATCH, SEQ), 0, VOCAB, dtype=jnp.int32)

    fwd = jax.jit(functools.partial(ngram_rnn_forward, params=params))
    out = jax.block_until_ready(fwd(tokens))

    ref = jax.block_until_ready(ngram_rnn_reference(tokens, params))
    assert out.shape == (BATCH, SEQ, VOCAB)
    assert jnp.allclose(out, ref, atol=1e-4, rtol=1e-4), "mismatch vs reference"

    print("KERNEL_OK")
</pallas_src>

<mosaic_0001>
module attributes {stable_mosaic.version = 11 : i64} {
  func.func @ngram_rnn_kernel(%arg0: i32, %arg1: memref<8x8x128xf32, #tpu.memory_space<vmem>>, %arg2: memref<128x128xf32, #tpu.memory_space<vmem>>, %arg3: memref<128x128xf32, #tpu.memory_space<vmem>>, %arg4: memref<1x128xf32, #tpu.memory_space<vmem>>, %arg5: memref<8x8x128xf32, #tpu.memory_space<vmem>>, %arg6: memref<8x128xf32, #tpu.memory_space<vmem>>, %arg7: memref<8x8x128xf32, #tpu.memory_space<vmem>>) attributes {dimension_semantics = [#tpu.dimension_semantics<arbitrary>], iteration_bounds = array<i64: 2>, scalar_prefetch = 0 : i64, scratch_operands = 2 : i64, tpu.core_type = #tpu.core_type<tc>, window_params = [{transform_indices = @transform_0, window_bounds = array<i64: 8, 8, 128>}, {pipeline_mode = #tpu.pipeline_mode<synchronous>, transform_indices = @transform_1, window_bounds = array<i64: 128, 128>}, {pipeline_mode = #tpu.pipeline_mode<synchronous>, transform_indices = @transform_2, window_bounds = array<i64: 128, 128>}, {pipeline_mode = #tpu.pipeline_mode<synchronous>, transform_indices = @transform_3, window_bounds = array<i64: 1, 128>}, {transform_indices = @transform_4, window_bounds = array<i64: 8, 8, 128>}]} {
    %c0_i32 = arith.constant 0 : i32
    %0 = arith.cmpi eq, %arg0, %c0_i32 : i32
    %1 = arith.extui %0 : i1 to i32
    %c0_i32_0 = arith.constant 0 : i32
    %2 = arith.cmpi ne, %1, %c0_i32_0 : i32
    scf.if %2 {
      %cst_73 = arith.constant 0.000000e+00 : f32
      %87 = vector.broadcast %cst_73 : f32 to vector<8x128xf32>
      %c0_74 = arith.constant 0 : index
      %c0_75 = arith.constant 0 : index
      %88 = vector.load %arg6[%c0_74, %c0_75] : memref<8x128xf32, #tpu.memory_space<vmem>>, vector<8x128xf32>
      tpu.vector_store %arg6[%c0_74, %c0_75], %87 {strides = array<i32>} : memref<8x128xf32, #tpu.memory_space<vmem>>, vector<8x128xf32>,
    } else {
    }
    %c0 = arith.constant 0 : index
    %c0_1 = arith.constant 0 : index
    %3 = vector.load %arg2[%c0, %c0_1] : memref<128x128xf32, #tpu.memory_space<vmem>>, vector<128x128xf32>
    %c0_2 = arith.constant 0 : index
    %c0_3 = arith.constant 0 : index
    %4 = vector.load %arg6[%c0_2, %c0_3] : memref<8x128xf32, #tpu.memory_space<vmem>>, vector<8x128xf32>
    %cst = arith.constant dense<0.000000e+00> : vector<8x128xf32>
    %5 = tpu.matmul %4, %3, %cst {dimension_numbers = #tpu.dot_dimension_numbers<[1], [0], [0], [1], [0, 0, 1, 1], [], []>} : vector<8x128xf32>, vector<128x128xf32>, vector<8x128xf32> -> vector<8x128xf32>
    %c0_4 = arith.constant 0 : index
    %c0_5 = arith.constant 0 : index
    %c0_6 = arith.constant 0 : index
    %6 = vector.load %arg1[%c0_4, %c0_5, %c0_6] : memref<8x8x128xf32, #tpu.memory_space<vmem>>, vector<1x8x128xf32>
    %7 = vector.shape_cast %6 : vector<1x8x128xf32> to vector<8x128xf32>
    %8 = arith.addf %5, %7 : vector<8x128xf32>
    %cst_7 = arith.constant 0.000000e+00 : f32
    %9 = vector.broadcast %cst_7 : f32 to vector<8x128xf32>
    %10 = arith.maximumf %8, %9 : vector<8x128xf32>
    %c0_8 = arith.constant 0 : index
    %c0_9 = arith.constant 0 : index
    %c0_10 = arith.constant 0 : index
    %11 = vector.load %arg7[%c0_8, %c0_9, %c0_10] : memref<8x8x128xf32, #tpu.memory_space<vmem>>, vector<1x8x128xf32>
    %12 = vector.shape_cast %11 : vector<1x8x128xf32> to vector<8x128xf32>
    %13 = vector.shape_cast %10 : vector<8x128xf32> to vector<1x8x128xf32>
    tpu.vector_store %arg7[%c0_8, %c0_9, %c0_10], %13 {strides = array<i32>} : memref<8x8x128xf32, #tpu.memory_space<vmem>>, vector<1x8x128xf32>,
    %cst_11 = arith.constant dense<0.000000e+00> : vector<8x128xf32>
    %14 = tpu.matmul %10, %3, %cst_11 {dimension_numbers = #tpu.dot_dimension_numbers<[1], [0], [0], [1], [0, 0, 1, 1], [], []>} : vector<8x128xf32>, vector<128x128xf32>, vector<8x128xf32> -> vector<8x128xf32>
    %c1 = arith.constant 1 : index
    %c0_12 = arith.constant 0 : index
    %c0_13 = arith.constant 0 : index
    %15 = vector.load %arg1[%c1, %c0_12, %c0_13] : memref<8x8x128xf32, #tpu.memory_space<vmem>>, vector<1x8x128xf32>
    %16 = vector.shape_cast %15 : vector<1x8x128xf32> to vector<8x128xf32>
    %17 = arith.addf %14, %16 : vector<8x128xf32>
    %cst_14 = arith.constant 0.000000e+00 : f32
    %18 = vector.broadcast %cst_14 : f32 to vector<8x128xf32>
    %19 = arith.maximumf %17, %18 : vector<8x128xf32>
    %c1_15 = arith.constant 1 : index
    %c0_16 = arith.constant 0 : index
    %c0_17 = arith.constant 0 : index
    %20 = vector.load %arg7[%c1_15, %c0_16, %c0_17] : memref<8x8x128xf32, #tpu.memory_space<vmem>>, vector<1x8x128xf32>
    %21 = vector.shape_cast %20 : vector<1x8x128xf32> to vector<8x128xf32>
    %22 = vector.shape_cast %19 : vector<8x128xf32> to vector<1x8x128xf32>
    tpu.vector_store %arg7[%c1_15, %c0_16, %c0_17], %22 {strides = array<i32>} : memref<8x8x128xf32, #tpu.memory_space<vmem>>, vector<1x8x128xf32>,
    %cst_18 = arith.constant dense<0.000000e+00> : vector<8x128xf32>
    %23 = tpu.matmul %19, %3, %cst_18 {dimension_numbers = #tpu.dot_dimension_numbers<[1], [0], [0], [1], [0, 0, 1, 1], [], []>} : vector<8x128xf32>, vector<128x128xf32>, vector<8x128xf32> -> vector<8x128xf32>
    %c2 = arith.constant 2 : index
    %c0_19 = arith.constant 0 : index
    %c0_20 = arith.constant 0 : index
    %24 = vector.load %arg1[%c2, %c0_19, %c0_20] : memref<8x8x128xf32, #tpu.memory_space<vmem>>, vector<1x8x128xf32>
    %25 = vector.shape_cast %24 : vector<1x8x128xf32> to vector<8x128xf32>
    %26 = arith.addf %23, %25 : vector<8x128xf32>
    %cst_21 = arith.constant 0.000000e+00 : f32
    %27 = vector.broadcast %cst_21 : f32 to vector<8x128xf32>
    %28 = arith.maximumf %26, %27 : vector<8x128xf32>
    %c2_22 = arith.constant 2 : index
    %c0_23 = arith.constant 0 : index
    %c0_24 = arith.constant 0 : index
    %29 = vector.load %arg7[%c2_22, %c0_23, %c0_24] : memref<8x8x128xf32, #tpu.memory_space<vmem>>, vector<1x8x128xf32>
    %30 = vector.shape_cast %29 : vector<1x8x128xf32> to vector<8x128xf32>
    %31 = vector.shape_cast %28 : vector<8x128xf32> to vector<1x8x128xf32>
    tpu.vector_store %arg7[%c2_22, %c0_23, %c0_24], %31 {strides = array<i32>} : memref<8x8x128xf32, #tpu.memory_space<vmem>>, vector<1x8x128xf32>,
    %cst_25 = arith.constant dense<0.000000e+00> : vector<8x128xf32>
    %32 = tpu.matmul %28, %3, %cst_25 {dimension_numbers = #tpu.dot_dimension_numbers<[1], [0], [0], [1], [0, 0, 1, 1], [], []>} : vector<8x128xf32>, vector<128x128xf32>, vector<8x128xf32> -> vector<8x128xf32>
    %c3 = arith.constant 3 : index
    %c0_26 = arith.constant 0 : index
    %c0_27 = arith.constant 0 : index
    %33 = vector.load %arg1[%c3, %c0_26, %c0_27] : memref<8x8x128xf32, #tpu.memory_space<vmem>>, vector<1x8x128xf32>
    %34 = vector.shape_cast %33 : vector<1x8x128xf32> to vector<8x128xf32>
    %35 = arith.addf %32, %34 : vector<8x128xf32>
    %cst_28 = arith.constant 0.000000e+00 : f32
    %36 = vector.broadcast %cst_28 : f32 to vector<8x128xf32>
    %37 = arith.maximumf %35, %36 : vector<8x128xf32>
    %c3_29 = arith.constant 3 : index
    %c0_30 = arith.constant 0 : index
    %c0_31 = arith.constant 0 : index
    %38 = vector.load %arg7[%c3_29, %c0_30, %c0_31] : memref<8x8x128xf32, #tpu.memory_space<vmem>>, vector<1x8x128xf32>
    %39 = vector.shape_cast %38 : vector<1x8x128xf32> to vector<8x128xf32>
    %40 = vector.shape_cast %37 : vector<8x128xf32> to vector<1x8x128xf32>
    tpu.vector_store %arg7[%c3_29, %c0_30, %c0_31], %40 {strides = array<i32>} : memref<8x8x128xf32, #tpu.memory_space<vmem>>, vector<1x8x128xf32>,
    %cst_32 = arith.constant dense<0.000000e+00> : vector<8x128xf32>
    %41 = tpu.matmul %37, %3, %cst_32 {dimension_numbers = #tpu.dot_dimension_numbers<[1], [0], [0], [1], [0, 0, 1, 1], [], []>} : vector<8x128xf32>, vector<128x128xf32>, vector<8x128xf32> -> vector<8x128xf32>
    %c4 = arith.constant 4 : index
    %c0_33 = arith.constant 0 : index
    %c0_34 = arith.constant 0 : index
    %42 = vector.load %arg1[%c4, %c0_33, %c0_34] : memref<8x8x128xf32, #tpu.memory_space<vmem>>, vector<1x8x128xf32>
    %43 = vector.shape_cast %42 : vector<1x8x128xf32> to vector<8x128xf32>
    %44 = arith.addf %41, %43 : vector<8x128xf32>
    %cst_35 = arith.constant 0.000000e+00 : f32
    %45 = vector.broadcast %cst_35 : f32 to vector<8x128xf32>
    %46 = arith.maximumf %44, %45 : vector<8x128xf32>
    %c4_36 = arith.constant 4 : index
    %c0_37 = arith.constant 0 : index
    %c0_38 = arith.constant 0 : index
    %47 = vector.load %arg7[%c4_36, %c0_37, %c0_38] : memref<8x8x128xf32, #tpu.memory_space<vmem>>, vector<1x8x128xf32>
    %48 = vector.shape_cast %47 : vector<1x8x128xf32> to vector<8x128xf32>
    %49 = vector.shape_cast %46 : vector<8x128xf32> to vector<1x8x128xf32>
    tpu.vector_store %arg7[%c4_36, %c0_37, %c0_38], %49 {strides = array<i32>} : memref<8x8x128xf32, #tpu.memory_space<vmem>>, vector<1x8x128xf32>,
    %cst_39 = arith.constant dense<0.000000e+00> : vector<8x128xf32>
    %50 = tpu.matmul %46, %3, %cst_39 {dimension_numbers = #tpu.dot_dimension_numbers<[1], [0], [0], [1], [0, 0, 1, 1], [], []>} : vector<8x128xf32>, vector<128x128xf32>, vector<8x128xf32> -> vector<8x128xf32>
    %c5 = arith.constant 5 : index
    %c0_40 = arith.constant 0 : index
    %c0_41 = arith.constant 0 : index
    %51 = vector.load %arg1[%c5, %c0_40, %c0_41] : memref<8x8x128xf32, #tpu.memory_space<vmem>>, vector<1x8x128xf32>
    %52 = vector.shape_cast %51 : vector<1x8x128xf32> to vector<8x128xf32>
    %53 = arith.addf %50, %52 : vector<8x128xf32>
    %cst_42 = arith.constant 0.000000e+00 : f32
    %54 = vector.broadcast %cst_42 : f32 to vector<8x128xf32>
    %55 = arith.maximumf %53, %54 : vector<8x128xf32>
    %c5_43 = arith.constant 5 : index
    %c0_44 = arith.constant 0 : index
    %c0_45 = arith.constant 0 : index
    %56 = vector.load %arg7[%c5_43, %c0_44, %c0_45] : memref<8x8x128xf32, #tpu.memory_space<vmem>>, vector<1x8x128xf32>
    %57 = vector.shape_cast %56 : vector<1x8x128xf32> to vector<8x128xf32>
    %58 = vector.shape_cast %55 : vector<8x128xf32> to vector<1x8x128xf32>
    tpu.vector_store %arg7[%c5_43, %c0_44, %c0_45], %58 {strides = array<i32>} : memref<8x8x128xf32, #tpu.memory_space<vmem>>, vector<1x8x128xf32>,
    %cst_46 = arith.constant dense<0.000000e+00> : vector<8x128xf32>
    %59 = tpu.matmul %55, %3, %cst_46 {dimension_numbers = #tpu.dot_dimension_numbers<[1], [0], [0], [1], [0, 0, 1, 1], [], []>} : vector<8x128xf32>, vector<128x128xf32>, vector<8x128xf32> -> vector<8x128xf32>
    %c6 = arith.constant 6 : index
    %c0_47 = arith.constant 0 : index
    %c0_48 = arith.constant 0 : index
    %60 = vector.load %arg1[%c6, %c0_47, %c0_48] : memref<8x8x128xf32, #tpu.memory_space<vmem>>, vector<1x8x128xf32>
    %61 = vector.shape_cast %60 : vector<1x8x128xf32> to vector<8x128xf32>
    %62 = arith.addf %59, %61 : vector<8x128xf32>
    %cst_49 = arith.constant 0.000000e+00 : f32
    %63 = vector.broadcast %cst_49 : f32 to vector<8x128xf32>
    %64 = arith.maximumf %62, %63 : vector<8x128xf32>
    %c6_50 = arith.constant 6 : index
    %c0_51 = arith.constant 0 : index
    %c0_52 = arith.constant 0 : index
    %65 = vector.load %arg7[%c6_50, %c0_51, %c0_52] : memref<8x8x128xf32, #tpu.memory_space<vmem>>, vector<1x8x128xf32>
    %66 = vector.shape_cast %65 : vector<1x8x128xf32> to vector<8x128xf32>
    %67 = vector.shape_cast %64 : vector<8x128xf32> to vector<1x8x128xf32>
    tpu.vector_store %arg7[%c6_50, %c0_51, %c0_52], %67 {strides = array<i32>} : memref<8x8x128xf32, #tpu.memory_space<vmem>>, vector<1x8x128xf32>,
    %cst_53 = arith.constant dense<0.000000e+00> : vector<8x128xf32>
    %68 = tpu.matmul %64, %3, %cst_53 {dimension_numbers = #tpu.dot_dimension_numbers<[1], [0], [0], [1], [0, 0, 1, 1], [], []>} : vector<8x128xf32>, vector<128x128xf32>, vector<8x128xf32> -> vector<8x128xf32>
    %c7 = arith.constant 7 : index
    %c0_54 = arith.constant 0 : index
    %c0_55 = arith.constant 0 : index
    %69 = vector.load %arg1[%c7, %c0_54, %c0_55] : memref<8x8x128xf32, #tpu.memory_space<vmem>>, vector<1x8x128xf32>
    %70 = vector.shape_cast %69 : vector<1x8x128xf32> to vector<8x128xf32>
    %71 = arith.addf %68, %70 : vector<8x128xf32>
    %cst_56 = arith.constant 0.000000e+00 : f32
    %72 = vector.broadcast %cst_56 : f32 to vector<8x128xf32>
    %73 = arith.maximumf %71, %72 : vector<8x128xf32>
    %c7_57 = arith.constant 7 : index
    %c0_58 = arith.constant 0 : index
    %c0_59 = arith.constant 0 : index
    %74 = vector.load %arg7[%c7_57, %c0_58, %c0_59] : memref<8x8x128xf32, #tpu.memory_space<vmem>>, vector<1x8x128xf32>
    %75 = vector.shape_cast %74 : vector<1x8x128xf32> to vector<8x128xf32>
    %76 = vector.shape_cast %73 : vector<8x128xf32> to vector<1x8x128xf32>
    tpu.vector_store %arg7[%c7_57, %c0_58, %c0_59], %76 {strides = array<i32>} : memref<8x8x128xf32, #tpu.memory_space<vmem>>, vector<1x8x128xf32>,
    %c0_60 = arith.constant 0 : index
    %c0_61 = arith.constant 0 : index
    %77 = vector.load %arg6[%c0_60, %c0_61] : memref<8x128xf32, #tpu.memory_space<vmem>>, vector<8x128xf32>
    tpu.vector_store %arg6[%c0_60, %c0_61], %73 {strides = array<i32>} : memref<8x128xf32, #tpu.memory_space<vmem>>, vector<8x128xf32>,
    %c0_62 = arith.constant 0 : index
    %c0_63 = arith.constant 0 : index
    %c0_64 = arith.constant 0 : index
    %78 = vector.load %arg7[%c0_62, %c0_63, %c0_64] : memref<8x8x128xf32, #tpu.memory_space<vmem>>, vector<8x8x128xf32>
    %79 = vector.shape_cast %78 : vector<8x8x128xf32> to vector<64x128xf32>
    %c0_65 = arith.constant 0 : index
    %c0_66 = arith.constant 0 : index
    %80 = vector.load %arg3[%c0_65, %c0_66] : memref<128x128xf32, #tpu.memory_space<vmem>>, vector<128x128xf32>
    %cst_67 = arith.constant dense<0.000000e+00> : vector<64x128xf32>
    %81 = tpu.matmul %79, %80, %cst_67 {dimension_numbers = #tpu.dot_dimension_numbers<[1], [0], [0], [1], [0, 0, 1, 1], [], []>} : vector<64x128xf32>, vector<128x128xf32>, vector<64x128xf32> -> vector<64x128xf32>
    %c0_68 = arith.constant 0 : index
    %c0_69 = arith.constant 0 : index
    %82 = vector.load %arg4[%c0_68, %c0_69] : memref<1x128xf32, #tpu.memory_space<vmem>>, vector<1x128xf32>
    %83 = vector.broadcast %82 : vector<1x128xf32> to vector<64x128xf32>
    %84 = arith.addf %81, %83 : vector<64x128xf32>
    %85 = vector.shape_cast %84 : vector<64x128xf32> to vector<8x8x128xf32>
    %c0_70 = arith.constant 0 : index
    %c0_71 = arith.constant 0 : index
    %c0_72 = arith.constant 0 : index
    %86 = vector.load %arg5[%c0_70, %c0_71, %c0_72] : memref<8x8x128xf32, #tpu.memory_space<vmem>>, vector<8x8x128xf32>
    tpu.vector_store %arg5[%c0_70, %c0_71, %c0_72], %85 {strides = array<i32>} : memref<8x8x128xf32, #tpu.memory_space<vmem>>, vector<8x8x128xf32>,
    return
  }
  func.func @transform_0(%arg0: i32) -> (i32, i32, i32) {
    %c0_i32 = arith.constant 0 : i32
    %c0_i32_0 = arith.constant 0 : i32
    %c0_i32_1 = arith.constant 0 : i32
    return %arg0, %c0_i32, %c0_i32_0 : i32, i32, i32
  }
  func.func @transform_1(%arg0: i32) -> (i32, i32) {
    %c0_i32 = arith.constant 0 : i32
    %c0_i32_0 = arith.constant 0 : i32
    %c0_i32_1 = arith.constant 0 : i32
    return %c0_i32, %c0_i32_0 : i32, i32
  }
  func.func @transform_2(%arg0: i32) -> (i32, i32) {
    %c0_i32 = arith.constant 0 : i32
    %c0_i32_0 = arith.constant 0 : i32
    %c0_i32_1 = arith.constant 0 : i32
    return %c0_i32, %c0_i32_0 : i32, i32
  }
  func.func @transform_3(%arg0: i32) -> (i32, i32) {
    %c0_i32 = arith.constant 0 : i32
    %c0_i32_0 = arith.constant 0 : i32
    %c0_i32_1 = arith.constant 0 : i32
    return %c0_i32, %c0_i32_0 : i32, i32
  }
  func.func @transform_4(%arg0: i32) -> (i32, i32, i32) {
    %c0_i32 = arith.constant 0 : i32
    %c0_i32_0 = arith.constant 0 : i32
    %c0_i32_1 = arith.constant 0 : i32
    return %arg0, %c0_i32, %c0_i32_0 : i32, i32, i32
  }
}

</mosaic_0001>

<bundles_post_ra>
// kernel: ngram_rnn_forward.1
= control target key start
LH: loop header
LB: loop body
LE: loop exit
PB: predicated region body
PF: predicated region fallthrough
CT: control target
= control target key end

     0   :  { %s1799_s15 = smov 0   ;;  %s2130_s0 = inlined_call_operand.vmem [shape: f32[16,8,128], index: 0, kind: input, shape index: {}]   ;;  %s2131_s1 = inlined_call_operand.vmem [shape: f32[128,128], index: 1, kind: input, shape index: {}]   ;;  %s2132_s2 = inlined_call_operand.vmem [shape: f32[128,128], index: 2, kind: input, shape index: {}]   ;;  %s2133_s3 = inlined_call_operand.vmem [shape: f32[1,128], index: 3, kind: input, shape index: {}]   ;;  %s2134_s4 = inlined_call_operand.vmem [shape: f32[16,8,128], index: 4, kind: output, shape index: {}]  }
   0x1 LB: > { %s1022_s16 = sadd.s32 4294967295, %s1768_s15   ;;  %p1026_p0 = scmp.ge.s32.totalorder %s1768_s15, 1  ;;  %s1768_s15 = sphi %s1799_s15, %s14_s15  }
   0x2   : > { %p163_p1 = scmp.lt.s32.totalorder %s1768_s15, 3 }
   0x4   : > { %p164_p2 = pnand %p1026_p0, %p163_p1 }
   0x5   : > { %s1027_s17 = sshll.u32 (!%p164_p2), %s1022_s16, 3  ;;  %p1031_p4 = scmp.ne.s32.totalorder (!%p164_p2), %s1022_s16, 0 }
   0x6   : > { %167 = sbr.rel (%p164_p2) target bundleno = 1998 (0x7ce), region = 36  ;;  %p190_p3 = scmp.lt.s32.totalorder (!%p164_p2), %s1027_s17, 15 }
   0xd   : > { %s2136_s17 = smov (!%p190_p3, %s1027_s17), 15  ;;  %204 = sbr.rel (%p1031_p4) target bundleno = 20 (0x14), region = 40 }
   0xe   : > { %s1028_s18 = sshll.u32 %s2136_s17, 3  ;;  %v1770_v0 = vmov (!%p1031_p4), 0.0  }
   0xf   : > { %s1810_s21 = scalar_lea.vmem %s2130_s0, %s1028_s18  ;;  %s1815_s24 = scalar_lea.vmem %s2134_s4, %s1028_s18  ;;  %205 = vst [vmem:[#allocation2] sm:$0xff] (!%p1031_p4), %v1770_v0 }
  0x14 PF: > { %v206_v1 = vld [vmem:[%s2131_s1] sm:$0xff]  ;;  %v207_v2 = vld [vmem:[%s2131_s1 + $0x8] sm:$0xff]  ;;  %v208_v3 = vld [vmem:[%s2131_s1 + $0x10] sm:$0xff]  ;;  %v1771_v4 = vmov 0.0|0.0   ;;  %vm1772_vm0 = vmmov 0   ;;  %v1773_v7 = vmov 0.0  }
  0x15   : > { %1526 = vmatprep.subr.bf16.mxu1 %v1771_v4  ;;  %v1827_v5 = vpack.c.bf16 %v207_v2, %v206_v1  ;;  %v209_v6 = vld [vmem:[%s2131_s1 + $0x18] sm:$0xff]  ;;  %1234 = vmatprep.mubr.msk.f32.mxu1 %vm1772_vm0, %v1773_v7  ;;  %v210_v9 = vld [vmem:[%s2131_s1 + $0x20] sm:$0xff]  ;;  %v211_v10 = vld [vmem:[%s2131_s1 + $0x28] sm:$0xff] }
  0x16   : > { %1574 = vmatprep.subr.bf16.mxu0 %v1771_v4  ;;  %1304 = vmatprep.mubr.msk.f32.mxu0 %vm1772_vm0, %v1773_v7  ;;  %v1838_v8 = vpack.c.bf16 %v209_v6, %v208_v3  ;;  %v1850_v11 = vpack.c.bf16 %v211_v10, %v210_v9  ;;  %v212_v12 = vld [vmem:[%s2131_s1 + $0x30] sm:$0xff]  ;;  %v213_v13 = vld [vmem:[%s2131_s1 + $0x38] sm:$0xff]  ;;  %v214_v15 = vld [vmem:[%s2131_s1 + $0x40] sm:$0xff] }
  0x17   : > { %1528 = vmatpush3.bf16.msra.mxu1 %v1827_v5  ;;  %1576 = vmatpush3.bf16.msra.mxu0 %v1827_v5  ;;  %v1862_v14 = vpack.c.bf16 %v213_v13, %v212_v12  ;;  %v215_v16 = vld [vmem:[%s2131_s1 + $0x48] sm:$0xff]  ;;  %v216_v18 = vld [vmem:[%s2131_s1 + $0x50] sm:$0xff]  ;;  %v217_v19 = vld [vmem:[%s2131_s1 + $0x58] sm:$0xff] }
  0x18   : > { %1529 = vmatprep.subr.bf16.mxu1 %v1771_v4  ;;  %1577 = vmatprep.subr.bf16.mxu0 %v1771_v4  ;;  %v1874_v17 = vpack.c.bf16 %v215_v16, %v214_v15  ;;  %v1886_v20 = vpack.c.bf16 %v217_v19, %v216_v18  ;;  %v218_v21 = vld [vmem:[%s2131_s1 + $0x60] sm:$0xff]  ;;  %v219_v22 = vld [vmem:[%s2131_s1 + $0x68] sm:$0xff]  ;;  %v220_v24 = vld [vmem:[%s2131_s1 + $0x70] sm:$0xff] }
  0x19   : > { %v1898_v23 = vpack.c.bf16 %v219_v22, %v218_v21  ;;  %v221_v25 = vld [vmem:[%s2131_s1 + $0x78] sm:$0xff]  ;;  %v222_v27 = vld [vmem:[#allocation2] sm:$0xff]  ;;  %v1032_v33 = vld [vmem:[%s1810_s21 + $0x8] sm:$0xff] }
  0x1a   : > { %v1910_v26 = vpack.c.bf16 %v221_v25, %v220_v24  ;;  %v223_v28 = vld [vmem:[%s1810_s21] sm:$0xff]  ;;  %v1033_v38 = vld [vmem:[%s1810_s21 + $0x10] sm:$0xff]  ;;  %v1034_v43 = vld [vmem:[%s1810_s21 + $0x18] sm:$0xff] }
  0x1b   : > { %1531 = vmatpush3.bf16.msra.mxu1 %v1838_v8  ;;  %1579 = vmatpush3.bf16.msra.mxu0 %v1838_v8  ;;  %v1035_v48 = vld [vmem:[%s1810_s21 + $0x20] sm:$0xff]  ;;  %v831_v54 = vld [vmem:[%s2132_s2 + $0x8] sm:$0xff]  ;;  %v832_v58 = vld [vmem:[%s2132_s2 + $0x10] sm:$0xff] }
  0x1c   : > { %1532 = vmatprep.subr.bf16.mxu1 %v1771_v4  ;;  %1580 = vmatprep.subr.bf16.mxu0 %v1771_v4  ;;  %v830_v53 = vld [vmem:[%s2132_s2] sm:$0xff]  ;;  %v1036_v56 = vld [vmem:[%s1810_s21 + $0x28] sm:$0xff]  ;;  %v833_v59 = vld [vmem:[%s2132_s2 + $0x18] sm:$0xff] }
  0x1d   : > { %v1718_v55 = vpack.c.bf16 %v831_v54, %v830_v53  ;;  %v1722_v63 = vpack.c.bf16 %v833_v59, %v832_v58  ;;  %v834_v0 = vld [vmem:[%s2132_s2 + $0x20] sm:$0xff]  ;;  %v835_v1 = vld [vmem:[%s2132_s2 + $0x28] sm:$0xff]  ;;  %v836_v3 = vld [vmem:[%s2132_s2 + $0x30] sm:$0xff] }
  0x1e   : > { %v1726_v2 = vpack.c.bf16 %v835_v1, %v834_v0  ;;  %v838_v6 = vld [vmem:[%s2132_s2 + $0x40] sm:$0xff]  ;;  %v840_v9 = vld [vmem:[%s2132_s2 + $0x50] sm:$0xff]  ;;  %v841_v10 = vld [vmem:[%s2132_s2 + $0x58] sm:$0xff] }
  0x1f   : > { %1534 = vmatpush3.bf16.msra.mxu1 %v1850_v11  ;;  %1582 = vmatpush3.bf16.msra.mxu0 %v1850_v11  ;;  %v842_v12 = vld [vmem:[%s2132_s2 + $0x60] sm:$0xff]  ;;  %v843_v13 = vld [vmem:[%s2132_s2 + $0x68] sm:$0xff]  ;;  %v844_v15 = vld [vmem:[%s2132_s2 + $0x70] sm:$0xff] }
  0x20   : > { %1535 = vmatprep.subr.bf16.mxu1 %v1771_v4  ;;  %1583 = vmatprep.subr.bf16.mxu0 %v1771_v4  ;;  %v845_v16 = vld [vmem:[%s2132_s2 + $0x78] sm:$0xff]  ;;  %v1037_v18 = vld [vmem:[%s1810_s21 + $0x30] sm:$0xff] }
  0x23   : > { %1537 = vmatpush3.bf16.msra.mxu1 %v1862_v14  ;;  %1585 = vmatpush3.bf16.msra.mxu0 %v1862_v14 }
  0x24   : > { %1538 = vmatprep.subr.bf16.mxu1 %v1771_v4  ;;  %1586 = vmatprep.subr.bf16.mxu0 %v1771_v4 }
  0x27   : > { %1540 = vmatpush3.bf16.msra.mxu1 %v1874_v17  ;;  %1588 = vmatpush3.bf16.msra.mxu0 %v1874_v17 }
  0x28   : > { %1541 = vmatprep.subr.bf16.mxu1 %v1771_v4  ;;  %1589 = vmatprep.subr.bf16.mxu0 %v1771_v4 }
  0x2b   : > { %1543 = vmatpush3.bf16.msra.mxu1 %v1886_v20  ;;  %1591 = vmatpush3.bf16.msra.mxu0 %v1886_v20 }
  0x2c   : > { %1544 = vmatprep.subr.bf16.mxu1 %v1771_v4  ;;  %1592 = vmatprep.subr.bf16.mxu0 %v1771_v4 }
  0x2f   : > { %1546 = vmatpush3.bf16.msra.mxu1 %v1898_v23  ;;  %1594 = vmatpush3.bf16.msra.mxu0 %v1898_v23 }
  0x30   : > { %1547 = vmatprep.subr.bf16.mxu1 %v1771_v4  ;;  %1595 = vmatprep.subr.bf16.mxu0 %v1771_v4 }
  0x33   : > { %1549 = vmatpush3.bf16.msra.mxu1 %v1910_v26  ;;  %1597 = vmatpush3.bf16.msra.mxu0 %v1910_v26 }
  0x34   : > { %1550 = vmatprep.subr.bf16.mxu1 %v1771_v4  ;;  %1622 = vmatprep.subr.bf16.mxu0 %v1771_v4 }
  0x36   : > { %1235 = vmatmul.mubr.f32.vlgmr.msra.gmra.mrb[0].mxu1 %v222_v27 }
  0x37   : > { %1552 = vmatpush3.bf16.msra.mxu1 %v1827_v5  ;;  %1269 = vmatprep.mubr.msk.f32.mxu1 %vm1772_vm0, %v1773_v7 }
  0x38   : > { %1553 = vmatprep.subr.bf16.mxu1 %v1771_v4 }
  0x3b   : > { %1555 = vmatpush3.bf16.msra.mxu1 %v1838_v8 }
  0x3c   : > { %1556 = vmatprep.subr.bf16.mxu1 %v1771_v4 }
  0x3f   : > { %1558 = vmatpush3.bf16.msra.mxu1 %v1850_v11 }
  0x40   : > { %1559 = vmatprep.subr.bf16.mxu1 %v1771_v4 }
  0x43   : > { %1561 = vmatpush3.bf16.msra.mxu1 %v1862_v14 }
  0x44   : > { %1562 = vmatprep.subr.bf16.mxu1 %v1771_v4 }
  0x47   : > { %1564 = vmatpush3.bf16.msra.mxu1 %v1874_v17 }
  0x48   : > { %1565 = vmatprep.subr.bf16.mxu1 %v1771_v4 }
  0x4b   : > { %1567 = vmatpush3.bf16.msra.mxu1 %v1886_v20 }
  0x4c   : > { %1568 = vmatprep.subr.bf16.mxu1 %v1771_v4 }
  0x4f   : > { %1570 = vmatpush3.bf16.msra.mxu1 %v1898_v23 }
  0x50   : > { %1571 = vmatprep.subr.bf16.mxu1 %v1771_v4 }
  0x53   : > { %1573 = vmatpush3.bf16.msra.mxu1 %v1910_v26 }
  0x54   : > { %1598 = vmatprep.subr.bf16.mxu1 %v1771_v4 }
 0x109   : > { %v290_v29 = vpop.f32.mrb[0].mxu1 }
 0x10a   : > { %v1938_v30 = vadd.f32 %v290_v29, %v223_v28  ;;  %v1236_v31 = vpop.f32.mrb[1].mxu1 }
 0x10c   : > { %v294_v32 = vmax.f32 %v1938_v30, 0.0 }
 0x10e   : > { %1270 = vmatmul.mubr.f32.vlgmr.msra.gmra.mrb[2].mxu1 %v294_v32 }
 0x10f   : > { %1600 = vmatpush3.bf16.msra.mxu1 %v1827_v5  ;;  %1339 = vmatprep.mubr.msk.f32.mxu1 %vm1772_vm0, %v1773_v7 }
 0x110   : > { %1601 = vmatprep.subr.bf16.mxu1 %v1771_v4 }
 0x113   : > { %1603 = vmatpush3.bf16.msra.mxu1 %v1838_v8 }
 0x114   : > { %1604 = vmatprep.subr.bf16.mxu1 %v1771_v4 }
 0x117   : > { %1606 = vmatpush3.bf16.msra.mxu1 %v1850_v11 }
 0x118   : > { %1607 = vmatprep.subr.bf16.mxu1 %v1771_v4 }
 0x11b   : > { %1609 = vmatpush3.bf16.msra.mxu1 %v1862_v14 }
 0x11c   : > { %1610 = vmatprep.subr.bf16.mxu1 %v1771_v4 }
 0x11f   : > { %1612 = vmatpush3.bf16.msra.mxu1 %v1874_v17 }
 0x120   : > { %1613 = vmatprep.subr.bf16.mxu1 %v1771_v4 }
 0x123   : > { %1615 = vmatpush3.bf16.msra.mxu1 %v1886_v20 }
 0x124   : > { %1616 = vmatprep.subr.bf16.mxu1 %v1771_v4 }
 0x127   : > { %1618 = vmatpush3.bf16.msra.mxu1 %v1898_v23 }
 0x128   : > { %1619 = vmatprep.subr.bf16.mxu1 %v1771_v4 }
 0x12b   : > { %1621 = vmatpush3.bf16.msra.mxu1 %v1910_v26 }
 0x12c   : > { %1646 = vmatprep.subr.bf16.mxu1 %v1771_v4 }
 0x1e1   : > { %v364_v34 = vpop.f32.mrb[2].mxu1 }
 0x1e2   : > { %v1962_v35 = vadd.f32 %v1032_v33, %v364_v34  ;;  %v1271_v36 = vpop.f32.mrb[3].mxu1 }
 0x1e3   : > { %v1038_v36 = vld [vmem:[%s1810_s21 + $0x38] sm:$0xff] }
 0x1e4   : > { %v368_v37 = vmax.f32 %v1962_v35, 0.0 }
 0x1e6   : > { %1305 = vmatmul.mubr.f32.vlgmr.msra.gmra.mrb[0].mxu0 %v368_v37 }
 0x1e7   : > { %1624 = vmatpush3.bf16.msra.mxu0 %v1827_v5  ;;  %1374 = vmatprep.mubr.msk.f32.mxu0 %vm1772_vm0, %v1773_v7 }
 0x1e8   : > { %1625 = vmatprep.subr.bf16.mxu0 %v1771_v4 }
 0x1eb   : > { %1627 = vmatpush3.bf16.msra.mxu0 %v1838_v8 }
 0x1ec   : > { %1628 = vmatprep.subr.bf16.mxu0 %v1771_v4 }
 0x1ef   : > { %1630 = vmatpush3.bf16.msra.mxu0 %v1850_v11 }
 0x1f0   : > { %1631 = vmatprep.subr.bf16.mxu0 %v1771_v4 }
 0x1f3   : > { %1633 = vmatpush3.bf16.msra.mxu0 %v1862_v14 }
 0x1f4   : > { %1634 = vmatprep.subr.bf16.mxu0 %v1771_v4 }
 0x1f7   : > { %1636 = vmatpush3.bf16.msra.mxu0 %v1874_v17 }
 0x1f8   : > { %1637 = vmatprep.subr.bf16.mxu0 %v1771_v4 }
 0x1fb   : > { %1639 = vmatpush3.bf16.msra.mxu0 %v1886_v20 }
 0x1fc   : > { %1640 = vmatprep.subr.bf16.mxu0 %v1771_v4 }
 0x1ff   : > { %1642 = vmatpush3.bf16.msra.mxu0 %v1898_v23 }
 0x200   : > { %1643 = vmatprep.subr.bf16.mxu0 %v1771_v4 }
 0x203   : > { %1645 = vmatpush3.bf16.msra.mxu0 %v1910_v26 }
 0x204   : > { %1670 = vmatprep.subr.bf16.mxu0 %v1771_v4 }
 0x2b9   : > { %v439_v39 = vpop.f32.mrb[0].mxu0 }
 0x2ba   : > { %v1986_v40 = vadd.f32 %v1033_v38, %v439_v39  ;;  %v1306_v41 = vpop.f32.mrb[1].mxu0 }
 0x2bc   : > { %v443_v42 = vmax.f32 %v1986_v40, 0.0 }
 0x2be   : > { %1340 = vmatmul.mubr.f32.vlgmr.msra.gmra.mrb[4].mxu1 %v443_v42 }
 0x2bf   : > { %1648 = vmatpush3.bf16.msra.mxu1 %v1827_v5  ;;  %1409 = vmatprep.mubr.msk.f32.mxu1 %vm1772_vm0, %v1773_v7 }
 0x2c0   : > { %1649 = vmatprep.subr.bf16.mxu1 %v1771_v4 }
 0x2c3   : > { %1651 = vmatpush3.bf16.msra.mxu1 %v1838_v8 }
 0x2c4   : > { %1652 = vmatprep.subr.bf16.mxu1 %v1771_v4 }
 0x2c7   : > { %1654 = vmatpush3.bf16.msra.mxu1 %v1850_v11 }
 0x2c8   : > { %1655 = vmatprep.subr.bf16.mxu1 %v1771_v4 }
 0x2cb   : > { %1657 = vmatpush3.bf16.msra.mxu1 %v1862_v14 }
 0x2cc   : > { %1658 = vmatprep.subr.bf16.mxu1 %v1771_v4 }
 0x2cf   : > { %1660 = vmatpush3.bf16.msra.mxu1 %v1874_v17 }
 0x2d0   : > { %1661 = vmatprep.subr.bf16.mxu1 %v1771_v4 }
 0x2d3   : > { %1663 = vmatpush3.bf16.msra.mxu1 %v1886_v20 }
 0x2d4   : > { %1664 = vmatprep.subr.bf16.mxu1 %v1771_v4 }
 0x2d7   : > { %1666 = vmatpush3.bf16.msra.mxu1 %v1898_v23 }
 0x2d8   : > { %1667 = vmatprep.subr.bf16.mxu1 %v1771_v4 }
 0x2db   : > { %1669 = vmatpush3.bf16.msra.mxu1 %v1910_v26 }
 0x2dc   : > { %1694 = vmatprep.subr.bf16.mxu1 %v1771_v4 }
 0x391   : > { %v514_v44 = vpop.f32.mrb[4].mxu1 }
 0x392   : > { %v2010_v45 = vadd.f32 %v1034_v43, %v514_v44  ;;  %v1341_v46 = vpop.f32.mrb[5].mxu1 }
 0x394   : > { %v518_v47 = vmax.f32 %v2010_v45, 0.0 }
 0x396   : > { %1375 = vmatmul.mubr.f32.vlgmr.msra.gmra.mrb[2].mxu0 %v518_v47 }
 0x397   : > { %1672 = vmatpush3.bf16.msra.mxu0 %v1827_v5  ;;  %1444 = vmatprep.mubr.msk.f32.mxu0 %vm1772_vm0, %v1773_v7 }
 0x398   : > { %1673 = vmatprep.subr.bf16.mxu0 %v1771_v4 }
 0x39b   : > { %1675 = vmatpush3.bf16.msra.mxu0 %v1838_v8 }
 0x39c   : > { %1676 = vmatprep.subr.bf16.mxu0 %v1771_v4 }
 0x39f   : > { %1678 = vmatpush3.bf16.msra.mxu0 %v1850_v11 }
 0x3a0   : > { %1679 = vmatprep.subr.bf16.mxu0 %v1771_v4 }
 0x3a3   : > { %1681 = vmatpush3.bf16.msra.mxu0 %v1862_v14 }
 0x3a4   : > { %1682 = vmatprep.subr.bf16.mxu0 %v1771_v4 }
 0x3a7   : > { %1684 = vmatpush3.bf16.msra.mxu0 %v1874_v17 }
 0x3a8   : > { %1685 = vmatprep.subr.bf16.mxu0 %v1771_v4 }
 0x3ab   : > { %1687 = vmatpush3.bf16.msra.mxu0 %v1886_v20 }
 0x3ac   : > { %1688 = vmatprep.subr.bf16.mxu0 %v1771_v4 }
 0x3af   : > { %1690 = vmatpush3.bf16.msra.mxu0 %v1898_v23 }
 0x3b0   : > { %1691 = vmatprep.subr.bf16.mxu0 %v1771_v4 }
 0x3b3   : > { %1693 = vmatpush3.bf16.msra.mxu0 %v1910_v26 }
 0x3b4   : > { %1719 = vmatprep.subr.bf16.mxu0 %v1718_v55 }
 0x469   : > { %v589_v49 = vpop.f32.mrb[2].mxu0 }
 0x46a   : > { %v2033_v50 = vadd.f32 %v1035_v48, %v589_v49  ;;  %v1376_v51 = vpop.f32.mrb[3].mxu0 }
 0x46c   : > { %v593_v52 = vmax.f32 %v2033_v50, 0.0 }
 0x46e   : > { %1410 = vmatmul.mubr.f32.vlgmr.msra.gmra.mrb[6].mxu1 %v593_v52 }
 0x46f   : > { %1696 = vmatpush3.bf16.msra.mxu1 %v1827_v5  ;;  %1479 = vmatprep.mubr.msk.f32.mxu1 %vm1772_vm0, %v1773_v7  ;;  %v839_v7 = vld [vmem:[%s2132_s2 + $0x48] sm:$0xff] }
 0x470   : > { %1697 = vmatprep.subr.bf16.mxu1 %v1771_v4 }
 0x473   : > { %1699 = vmatpush3.bf16.msra.mxu1 %v1838_v8  ;;  %v1734_v8 = vpack.c.bf16 %v839_v7, %v838_v6 }
 0x474   : > { %1700 = vmatprep.subr.bf16.mxu1 %v1771_v4 }
 0x477   : > { %1702 = vmatpush3.bf16.msra.mxu1 %v1850_v11  ;;  %v1738_v11 = vpack.c.bf16 %v841_v10, %v840_v9 }
 0x478   : > { %1703 = vmatprep.subr.bf16.mxu1 %v1771_v4 }
 0x47b   : > { %1705 = vmatpush3.bf16.msra.mxu1 %v1862_v14  ;;  %v1742_v14 = vpack.c.bf16 %v843_v13, %v842_v12 }
 0x47c   : > { %1706 = vmatprep.subr.bf16.mxu1 %v1771_v4 }
 0x47f   : > { %1708 = vmatpush3.bf16.msra.mxu1 %v1874_v17  ;;  %v1746_v17 = vpack.c.bf16 %v845_v16, %v844_v15 }
 0x480   : > { %1709 = vmatprep.subr.bf16.mxu1 %v1771_v4 }
 0x483   : > { %1711 = vmatpush3.bf16.msra.mxu1 %v1886_v20 }
 0x484   : > { %1712 = vmatprep.subr.bf16.mxu1 %v1771_v4 }
 0x487   : > { %1714 = vmatpush3.bf16.msra.mxu1 %v1898_v23  ;;  %v1039_v23 = vld [vmem:[%s2133_s3] ss:$0 sm:$0xff] }
 0x488   : > { %1715 = vmatprep.subr.bf16.mxu1 %v1771_v4  ;;  %v837_v4 = vld [vmem:[%s2132_s2 + $0x38] sm:$0xff] }
 0x489   : > { %v1730_v5 = vpack.c.bf16 %v837_v4, %v836_v3 }
 0x48b   : > { %1717 = vmatpush3.bf16.msra.mxu1 %v1910_v26 }
 0x541   : > { %v664_v57 = vpop.f32.mrb[6].mxu1 }
 0x542   : > { %v665_v60 = vadd.f32 %v1036_v56, %v664_v57  ;;  %v1411_v61 = vpop.f32.mrb[7].mxu1 }
 0x544   : > { %v668_v62 = vmax.f32 %v665_v60, 0.0 }
 0x546   : > { %1445 = vmatmul.mubr.f32.vlgmr.msra.gmra.mrb[4].mxu0 %v668_v62 }
 0x547   : > { %1721 = vmatpush3.bf16.msra.mxu0 %v1718_v55  ;;  %1514 = vmatprep.mubr.f32.mxu0 %v294_v32 }
 0x548   : > { %1723 = vmatprep.subr.bf16.mxu0 %v1722_v63 }
 0x54b   : > { %1725 = vmatpush3.bf16.msra.mxu0 %v1722_v63 }
 0x54c   : > { %1727 = vmatprep.subr.bf16.mxu0 %v1726_v2 }
 0x54f   : > { %1729 = vmatpush3.bf16.msra.mxu0 %v1726_v2 }
 0x550   : > { %1731 = vmatprep.subr.bf16.mxu0 %v1730_v5 }
 0x553   : > { %1733 = vmatpush3.bf16.msra.mxu0 %v1730_v5 }
 0x554   : > { %1735 = vmatprep.subr.bf16.mxu0 %v1734_v8 }
 0x557   : > { %1737 = vmatpush3.bf16.msra.mxu0 %v1734_v8 }
 0x558   : > { %1739 = vmatprep.subr.bf16.mxu0 %v1738_v11 }
 0x55b   : > { %1741 = vmatpush3.bf16.msra.mxu0 %v1738_v11 }
 0x55c   : > { %1743 = vmatprep.subr.bf16.mxu0 %v1742_v14 }
 0x55f   : > { %1745 = vmatpush3.bf16.msra.mxu0 %v1742_v14 }
 0x560   : > { %1747 = vmatprep.subr.bf16.mxu0 %v1746_v17 }
 0x563   : > { %1749 = vmatpush3.bf16.msra.mxu0 %v1746_v17 }
 0x566   : > { %1515 = vmatmul.mubr.f32.vlgmr.msra.gmra.mrb[6].mxu0 %v368_v37 }
 0x567   : > { %1517 = vmatprep.mubr.f32.mxu0 %v443_v42 }
 0x56a   : > { %1518 = vmatmul.mubr.f32.gmra.mrb[8].mxu0 %v518_v47 }
 0x56b   : > { %1520 = vmatprep.mubr.f32.mxu0 %v593_v52 }
 0x56e   : > { %1521 = vmatmul.mubr.f32.gmra.mrb[10].mxu0 %v668_v62 }
 0x619   : > { %v739_v19 = vpop.f32.mrb[4].mxu0 }
 0x61a   : > { %v740_v20 = vadd.f32 %v1037_v18, %v739_v19  ;;  %v1446_v21 = vpop.f32.mrb[5].mxu0 }
 0x61c   : > { %v743_v22 = vmax.f32 %v740_v20, 0.0 }
 0x61e   : > { %1480 = vmatmul.mubr.f32.vlgmr.msra.gmra.mrb[8].mxu1 %v743_v22  ;;  %1523 = vmatprep.mubr.f32.mxu0 %v743_v22 }
 0x639   : > { %v1516_v24 = vpop.f32.mrb[6].mxu0 }
 0x63a   : > { %v925_v25 = vadd.f32 %v1516_v24, %v1039_v23  ;;  %v919_v26 = vpop.f32.mrb[7].mxu0 }
 0x63b   : > { %v920_v27 = vadd.f32 %v1039_v23, %v919_v26 }
 0x63c   : > { %959 = vst [vmem:[%s1815_s24 + $0x8] sm:$0xff] %v925_v25 }
 0x63d   : > { %958 = vst [vmem:[%s1815_s24] sm:$0xff] %v920_v27  ;;  %v1519_v28 = vpop.f32.mrb[8].mxu0 }
 0x63e   : > { %v935_v29 = vadd.f32 %v1519_v28, %v1039_v23  ;;  %v929_v30 = vpop.f32.mrb[9].mxu0 }
 0x63f   : > { %v930_v31 = vadd.f32 %v1039_v23, %v929_v30 }
 0x640   : > { %961 = vst [vmem:[%s1815_s24 + $0x18] sm:$0xff] %v935_v29 }
 0x641   : > { %960 = vst [vmem:[%s1815_s24 + $0x10] sm:$0xff] %v930_v31  ;;  %v1522_v32 = vpop.f32.mrb[10].mxu0 }
 0x642   : > { %v945_v33 = vadd.f32 %v1522_v32, %v1039_v23  ;;  %v939_v34 = vpop.f32.mrb[11].mxu0 }
 0x643   : > { %v940_v35 = vadd.f32 %v1039_v23, %v939_v34 }
 0x644   : > { %963 = vst [vmem:[%s1815_s24 + $0x28] sm:$0xff] %v945_v33 }
 0x645   : > { %962 = vst [vmem:[%s1815_s24 + $0x20] sm:$0xff] %v940_v35 }
 0x6f1   : > { %v814_v37 = vpop.f32.mrb[8].mxu1 }
 0x6f2   : > { %v815_v38 = vadd.f32 %v1038_v36, %v814_v37  ;;  %v1481_v39 = vpop.f32.mrb[9].mxu1 }
 0x6f4   : > { %v818_v40 = vmax.f32 %v815_v38, 0.0 }
 0x6f6   : > { %821 = vst [vmem:[#allocation2] sm:$0xff] %v818_v40  ;;  %1524 = vmatmul.mubr.f32.gmra.mrb[12].mxu0 %v818_v40 }
 0x7c9   : > { %v1525_v41 = vpop.f32.mrb[12].mxu0 }
 0x7ca   : > { %v955_v42 = vadd.f32 %v1525_v41, %v1039_v23  ;;  %v949_v43 = vpop.f32.mrb[13].mxu0 }
 0x7cb   : > { %v950_v44 = vadd.f32 %v1039_v23, %v949_v43 }
 0x7cc   : > { %965 = vst [vmem:[%s1815_s24 + $0x38] sm:$0xff] %v955_v42 }
 0x7cd   : > { %964 = vst [vmem:[%s1815_s24 + $0x30] sm:$0xff] %v950_v44 }
 0x7ce PF: > { %s14_s15 = sadd.s32 1, %s1768_s15  }
 0x7cf   : > { %p11_p5 = scmp.ge.s32.totalorder %s14_s15, 4  }
 0x7d1   :  { %13 = sbr.rel (!%p11_p5) target bundleno = 1 (0x1), region = 84 }

</bundles_post_ra>
